<compile_context>
chip_gen: v7x
topology: tpu7x:2x2x1
jax: 0.10.0
libtpu: 0.0.40
codegen_flags: <defaults>
</compile_context>

<pallas_src>
import jax
import jax.numpy as jnp
from jax.experimental import pallas as pl
from jax.experimental.pallas import tpu as pltpu


def _copy_kernel(x_ref, o_ref):
    # Straight lane-dense copy of a [rt, C] tile (C % 128 == 0 -> unmasked vst).
    o_ref[...] = x_ref[...]


def _pack_rows(itemsize):
    # Sublane packing: f32 -> 8 rows / packed tile, bf16 -> 16, int8/fp8 -> 32.
    return max(8, 32 // max(1, itemsize))


def _pick_slab(total_elems, fallback_rows, fallback_cols, itemsize):
    """Choose a lane-dense [rows, cols] factorization of the flat buffer."""
    pack = _pack_rows(itemsize)
    candidates = (4096, 2048, 1024, 512, 256, 128)
    # 1st pass: enough rows for >=2 pack-aligned tiles (pipelining / 2-TC split).
    for cols in candidates:
        if total_elems % cols == 0:
            rows = total_elems // cols
            if rows >= 2 * pack and rows % pack == 0:
                return rows, cols
    # 2nd pass: at least one full packed tile.
    for cols in candidates:
        if total_elems % cols == 0:
            rows = total_elems // cols
            if rows >= pack and rows % pack == 0:
                return rows, cols
    # 3rd pass: any lane-dense factorization.
    for cols in candidates:
        if total_elems % cols == 0:
            return total_elems // cols, cols
    # TODO(synk): total not a multiple of 128 lanes -> masked stores (rare).
    return fallback_rows, fallback_cols


def _pick_row_tile(rows, cols, itemsize, budget_bytes=2 * 1024 * 1024):
    """Largest pack-aligned row tile dividing `rows`, ~<= 2 MiB (v5e-safe)."""
    pack = _pack_rows(itemsize)
    budget_rows = max(pack, budget_bytes // max(1, cols * itemsize))
    rt = min(rows, budget_rows)
    # Prefer >= 2 grid steps so the DMA pipeline overlaps and v7x's two
    # TensorCores both get work, when rows permit it.
    if rows >= 2 * pack:
        rt = min(rt, rows // 2)
    rt = max(pack, (rt // pack) * pack)
    while rt > pack and rows % rt != 0:
        rt -= pack
    if rows % rt != 0:
        rt = rows  # full-extent block is always legal
    return rt


def m_forward(x368, x366, heads=12, head_dim=64):
    """Equivalent of M.forward.

    x368: python tuple, e.g. (B, S)
    x366: jnp array of shape [B, S, H] with H == heads * head_dim
    """
    # x369 = operator.add(x368, (heads, head_dim)) -- static tuple concat
    x369 = tuple(x368) + (heads, head_dim)
    B, S, H = x366.shape
    assert H == heads * head_dim
    assert x369 == (B, S, heads, head_dim)

    itemsize = jnp.dtype(x366.dtype).itemsize
    total = B * S * H

    rows, cols = _pick_slab(total, B * S, H, itemsize)
    rt = _pick_row_tile(rows, cols, itemsize)

    x_flat = x366.reshape(rows, cols)  # free, metadata-only reshape

    copied = pl.pallas_call(
        _copy_kernel,
        out_shape=jax.ShapeDtypeStruct((rows, cols), x366.dtype),
        grid_spec=pl.GridSpec(
            grid=(rows // rt,),
            in_specs=[pl.BlockSpec((rt, cols), lambda i: (i, 0))],
            out_specs=pl.BlockSpec((rt, cols), lambda i: (i, 0)),
        ),
        compiler_params=pltpu.CompilerParams(
            dimension_semantics=("parallel",),
        ),
        # Kernel writes every output element -> safe to donate the input.
        input_output_aliases={0: 0},
        # Pure-bandwidth custom call: help XLA's scheduler overlap it.
        cost_estimate=pl.CostEstimate(
            flops=0, transcendentals=0, bytes_accessed=2 * total * itemsize),
    )(x_flat)

    # Head split (== torch .view): free, metadata-only reshape in XLA.
    return copied.reshape(x369)


if __name__ == "__main__":
    # Small shapes consistent with the module:
    # original was (1, 384, 768) viewed as (1, 384, 12, 64);
    # here B=2, S=64, H=128 viewed as (2, 64, 8, 16).
    B, S, heads, head_dim = 2, 64, 8, 16
    H = heads * head_dim

    key = jax.random.PRNGKey(0)
    x366 = jax.random.normal(key, (B, S, H), dtype=jnp.float32)
    x368 = (B, S)

    out = jax.block_until_ready(m_forward(x368, x366, heads, head_dim))

    # Correctness check against plain-JAX reshape (== torch .view semantics).
    ref = x366.reshape(B, S, heads, head_dim)
    assert out.shape == (B, S, heads, head_dim)
    assert jnp.array_equal(out, ref)

    print("KERNEL_OK")
</pallas_src>

<mosaic_0001>
module attributes {stable_mosaic.version = 11 : i64} {
  func.func @_copy_kernel(%arg0: i32, %arg1: memref<8x1024xf32, #tpu.memory_space<vmem>>, %arg2: memref<8x1024xf32, #tpu.memory_space<vmem>>) attributes {dimension_semantics = [#tpu.dimension_semantics<parallel>], iteration_bounds = array<i64: 2>, scalar_prefetch = 0 : i64, scratch_operands = 0 : i64, tpu.core_type = #tpu.core_type<tc>, window_params = [{transform_indices = @transform_0, window_bounds = array<i64: 8, 1024>}, {transform_indices = @transform_1, window_bounds = array<i64: 8, 1024>}]} {
    %c0 = arith.constant 0 : index
    %c0_0 = arith.constant 0 : index
    %0 = vector.load %arg1[%c0, %c0_0] : memref<8x1024xf32, #tpu.memory_space<vmem>>, vector<8x1024xf32>
    %c0_1 = arith.constant 0 : index
    %c0_2 = arith.constant 0 : index
    %1 = vector.load %arg2[%c0_1, %c0_2] : memref<8x1024xf32, #tpu.memory_space<vmem>>, vector<8x1024xf32>
    tpu.vector_store %arg2[%c0_1, %c0_2], %0 {strides = array<i32>} : memref<8x1024xf32, #tpu.memory_space<vmem>>, vector<8x1024xf32>,
    return
  }
  func.func @transform_0(%arg0: i32) -> (i32, i32) {
    %c0_i32 = arith.constant 0 : i32
    %c0_i32_0 = arith.constant 0 : i32
    return %arg0, %c0_i32 : i32, i32
  }
  func.func @transform_1(%arg0: i32) -> (i32, i32) {
    %c0_i32 = arith.constant 0 : i32
    %c0_i32_0 = arith.constant 0 : i32
    return %arg0, %c0_i32 : i32, i32
  }
}

</mosaic_0001>

<bundles_post_ra>
// kernel: tpu_custom_call.1
= control target key start
LH: loop header
LB: loop body
LE: loop exit
PB: predicated region body
PF: predicated region fallthrough
CT: control target
= control target key end

     0   :  { %6 = vsyncpa [#allocation3], 0  ;;  %s567_s0 = inlined_call_operand.hbm [shape: f32[16,1024], index: 0, kind: input, shape index: {}, may-alias: {0,1}]   ;;  %s568_s1 = inlined_call_operand.hbm [shape: f32[16,1024], index: 1, kind: output, shape index: {}, may-alias: {0,1}]  }
   0x1   :  { %8 = vsyncpa [#allocation3 + $0x1], 0 }
   0x2   :  { %9 = vsyncpa [#allocation4], 0 }
   0x3   :  { %11 = vsyncpa [#allocation4 + $0x1], 0  ;;  %s406_s6 = smov 0   ;;  %s408_s7 = smov 0  }
   0x4   :  { %s410_s8 = smov 0   ;;  %s412_s9 = smov 0  }
   0x5 LB: > { %s427_s10 = sadd.s32 4294967295, %s392_s9   ;;  %s234_s11 = sadd.s32 4294967294, %s392_s9   ;;  %s392_s9 = sphi %s412_s9, %s583_s9   ;;  %s388_s8 = sphi %s410_s8, %s582_s8   ;;  %s384_s7 = sphi %s408_s7, %s581_s7   ;;  %s380_s6 = sphi %s406_s6, %s580_s6  }
   0x6   : > { %s431_s12 = sadd.s32 1, %s392_s9   ;;  %s24_s13 = sadd.s32 1, %s388_s8 }
   0x7   : > { %s21_s14 = ssub.s32 %s392_s9, %s431_s12  ;;  %p31_p0 = scmp.ne.s32.totalorder %s388_s8, %s384_s7 }
   0x8   : > { %p22_p1 = scmp.eq.s32.totalorder %s21_s14, 0  ;;  %p32_p2 = scmp.eq.s32.totalorder %s392_s9, 0 }
   0x9   : > { %p37_p3 = scmp.ne.s32.totalorder %s384_s7, %s380_s6  ;;  %p38_p4 = scmp.eq.s32.totalorder %s427_s10, 0 }
   0xa   : > { %s443_s15 = scalar_select %p22_p1, %s388_s8, %s24_s13  }
   0xb   : > { %p445_p5 = por %p32_p2, %p31_p0  ;;  %p449_p6 = por %p38_p4, %p37_p3 }
   0xc   : > { %p61_p7 = scmp.eq.s32.totalorder %s427_s10, 1  ;;  %p67_p8 = scmp.eq.s32.totalorder %s234_s11, 1 }
   0xd   : > { %p262_p10 = scmp.lt.s32.totalorder %s392_s9, 2  ;;  %s87_s20 = sand.u32 1, %s388_s8  }
   0xe   : > { %p456_p11 = por %p61_p7, %p31_p0  ;;  %p460_p12 = por %p67_p8, %p37_p3 }
   0xf   : > { %s248_s21 = sshll.u32 %s392_s9, 10  ;;  %s237_s22 = sshll.u32 %s87_s20, 6 }
  0x10   : > { %s572_s18 = scalar_select %p456_p11, 1, 0 }
  0x11   : > { %s573_s19 = scalar_select %p460_p12, 1, 0 }
  0x12   : > { %s469_s25 = scalar_lea.hbm %s567_s0, %s248_s21  ;;  %s91_s26 = scalar_lea.vmem [#allocation2], %s237_s22 }
  0x13   : > { %s99_s27 = sshll.u32 %s91_s26, 4  ;;  %p473_p13 = pnand %p262_p10, %p445_p5  ;;  %s477_s27 = int_to_ptr.vmem [resolvable:$true] %s99_s27 }
  0x14   : > { %s88_s29 = scalar_lea.sflag [#allocation3], %s87_s20  ;;  %s296_s30 = scalar_lea.hbm %s469_s25, 1024 }
  0x15   : > { %p297_p2 = scmp.ne.s32.totalorder %s469_s25, %s296_s30  ;;  %p298_p3 = pneg %p473_p13 }
  0x16   : > { %s301_s4 = scalar_lea.hbm %s567_s0, 2048  ;;  %p302_p5 = scmp.lt.u32.totalorder %s469_s25, %s567_s0 }
  0x17   : > { %p299_p4 = pnand %p298_p3, %p297_p2  ;;  %p303_p8 = scmp.lt.u32.totalorder %s301_s4, %s296_s30 }
  0x18   : > { %p305_p9 = scmp.lt.u32.totalorder %s296_s30, %s469_s25 }
  0x19   : > { %p300_p7 = pneg %p299_p4  ;;  %p304_p10 = por %p303_p8, %p302_p5 }
  0x1b   : > { %p306_p0 = por %p305_p9, %p304_p10 }
  0x1d   : > { %p307_p1 = pnand %p306_p0, %p300_p7 }
  0x1f   : > { %310 = shalt.err (!%p307_p1)
}
  0x20   : > { %s311_s13 = scalar_lea.vmem %s477_s27, 1024  ;;  %s394_s14 = smov [#allocation2]  }
  0x21   : > { %p312_p2 = scmp.ne.s32.totalorder %s477_s27, %s311_s13  ;;  %s316_s16 = sshll.u32 %s394_s14, 4  ;;  %s317_s16 = int_to_ptr.vmem [resolvable:$false] %s316_s16 }
  0x22   : > { %s318_s20 = scalar_lea.vmem %s317_s16, 2048  ;;  %p319_p11 = scmp.lt.s32.totalorder %s477_s27, %s317_s16 }
  0x23   : > { %p314_p4 = pnand %p312_p2, %p298_p3  ;;  %p320_p5 = scmp.lt.s32.totalorder %s318_s20, %s311_s13 }
  0x25   : > { %p315_p12 = pneg %p314_p4  ;;  %p321_p8 = por %p320_p5, %p319_p11 }
  0x27   : > { %p322_p9 = pnand %p321_p8, %p315_p12 }
  0x29   : > { %325 = shalt.err (!%p322_p9)
}
  0x2a   : > { %257 = dma.hbm_to_vmem [thread:$0]  (!%p473_p13), %s469_s25, 1024, %s477_s27, %s88_s29  }
  0x2b   : > { %p575_p0 = scmp.lt.s32.totalorder %s392_s9, 3  ;;  %p576_p1 = scmp.ge.s32.totalorder %s392_s9, 1 }
  0x2d   : > { %p105_p3 = pnand %p576_p1, %p575_p0 }
  0x2e   : > { %s511_s21 = sand.u32 (!%p105_p3), 1, %s384_s7  }
  0x2f   : > { %108 = sbr.rel (%p105_p3) target bundleno = 81 (0x51), region = 24  ;;  %s241_s22 = sshll.u32 (!%p105_p3), %s511_s21, 6 }
  0x30   : > { %s111_s23 = scalar_lea.sflag (!%p105_p3), [#allocation3], %s511_s21  ;;  %s114_s24 = scalar_lea.vmem (!%p105_p3), [#allocation2], %s241_s22 }
  0x36   : > { %371 = dma.done.wait (%p449_p6), %s111_s23, 1024  }
  0x37   : > { %373 = vsyncadd (%p449_p6), %s111_s23, 4294966272  ;;  %s249_s25 = sshll.u32 %s427_s10, 10  ;;  %s132_s26 = scalar_lea.vmem [#allocation5], %s241_s22  ;;  %v133_v0 = vld [vmem:[%s114_s24] sm:$0xff]  ;;  %v134_v1 = vld [vmem:[%s114_s24 + $0x8] sm:$0xff] }
  0x38   : > { %s164_s27 = sshll.u32 %s132_s26, 4  ;;  %v135_v2 = vld [vmem:[%s114_s24 + $0x10] sm:$0xff]  ;;  %141 = vst [vmem:[%s132_s26] sm:$0xff] %v133_v0  ;;  %142 = vst [vmem:[%s132_s26 + $0x8] sm:$0xff] %v134_v1  ;;  %v136_v3 = vld [vmem:[%s114_s24 + $0x18] sm:$0xff]  ;;  %s523_s17 = scalar_lea.hbm %s568_s1, %s249_s25  ;;  %s525_s27 = int_to_ptr.vmem [resolvable:$true] %s164_s27 }
  0x39   : > { %143 = vst [vmem:[%s132_s26 + $0x10] sm:$0xff] %v135_v2  ;;  %v137_v4 = vld [vmem:[%s114_s24 + $0x20] sm:$0xff]  ;;  %v138_v5 = vld [vmem:[%s114_s24 + $0x28] sm:$0xff]  ;;  %144 = vst [vmem:[%s132_s26 + $0x18] sm:$0xff] %v136_v3  ;;  %s150_s10 = scalar_lea.sflag [#allocation4], %s511_s21  ;;  %s326_s30 = scalar_lea.vmem %s525_s27, 1024 }
  0x3a   : > { %145 = vst [vmem:[%s132_s26 + $0x20] sm:$0xff] %v137_v4  ;;  %146 = vst [vmem:[%s132_s26 + $0x28] sm:$0xff] %v138_v5  ;;  %v139_v6 = vld [vmem:[%s114_s24 + $0x30] sm:$0xff]  ;;  %v140_v7 = vld [vmem:[%s114_s24 + $0x38] sm:$0xff]  ;;  %p327_p6 = scmp.ne.s32.totalorder %s525_s27, %s326_s30  ;;  %p577_p11 = scmp.ne.s32.totalorder %s572_s18, 0 }
  0x3b   : > { %147 = vst [vmem:[%s132_s26 + $0x30] sm:$0xff] %v139_v6  ;;  %148 = vst [vmem:[%s132_s26 + $0x38] sm:$0xff] %v140_v7  ;;  %s395_s2 = smov [#allocation5]  }
  0x3c   : > { %p328_p12 = pnand %p327_p6, %p577_p11  ;;  %s330_s3 = sshll.u32 %s395_s2, 4  ;;  %s331_s3 = int_to_ptr.vmem [resolvable:$false] %s330_s3 }
  0x3d   : > { %s332_s4 = scalar_lea.vmem %s331_s3, 2048  ;;  %p333_p7 = scmp.lt.s32.totalorder %s525_s27, %s331_s3 }
  0x3e   : > { %p329_p13 = pneg %p328_p12  ;;  %p334_p10 = scmp.lt.s32.totalorder %s332_s4, %s326_s30 }
  0x40   : > { %p335_p2 = por %p334_p10, %p333_p7 }
  0x42   : > { %p336_p4 = pnand %p335_p2, %p329_p13 }
  0x44   : > { %339 = shalt.err (!%p336_p4)
}
  0x45   : > { %s340_s5 = scalar_lea.hbm %s523_s17, 1024  ;;  %s344_s14 = scalar_lea.hbm %s568_s1, 2048 }
  0x46   : > { %p341_p5 = scmp.ne.s32.totalorder %s523_s17, %s340_s5  ;;  %p345_p0 = scmp.lt.u32.totalorder %s523_s17, %s568_s1 }
  0x47   : > { %p346_p1 = scmp.lt.u32.totalorder %s344_s14, %s340_s5  ;;  %p348_p6 = scmp.lt.u32.totalorder %s340_s5, %s523_s17 }
  0x48   : > { %p342_p8 = pnand %p341_p5, %p577_p11 }
  0x49   : > { %p347_p3 = por %p346_p1, %p345_p0 }
  0x4a   : > { %p343_p9 = pneg %p342_p8 }
  0x4b   : > { %p349_p12 = por %p348_p6, %p347_p3 }
  0x4d   : > { %p350_p13 = pnand %p349_p12, %p343_p9 }
  0x4f   : > { %353 = shalt.err (!%p350_p13)
}
  0x50   : > { %252 = dma.vmem_to_hbm [thread:$0]  (%p577_p11), %s525_s27, 1024, %s523_s17, %s150_s10  }
  0x51 PF: > { %s176_s21 = sand.u32 1, %s380_s6   ;;  %p578_p7 = scmp.ne.s32.totalorder %s573_s19, 0 }
  0x52   : > { %p579_p10 = scmp.ge.s32.totalorder %s392_s9, 2  ;;  %s177_s22 = scalar_lea.sflag [#allocation4], %s176_s21 }
  0x54   : > { %p259_p2 = pnand %p579_p10, %p578_p7 }
  0x56   : > { %375 = dma.done.wait (!%p259_p2), %s177_s22, 1024  }
  0x57   : > { %377 = vsyncadd (!%p259_p2), %s177_s22, 4294966272  ;;  %p14_p4 = scmp.ge.s32.totalorder %s431_s12, 4   ;;  %s580_s6 = smov %s384_s7 }
  0x58   : > { %s581_s7 = smov %s388_s8  ;;  %s582_s8 = smov %s443_s15 }
  0x59   : > { %s583_s9 = smov %s431_s12  ;;  %16 = sbr.rel (!%p14_p4) target bundleno = 5 (0x5), region = 69 }
  0x60   :  { %182 = vsyncpa [#allocation3], 1 }
  0x61   :  { %184 = vsyncpa [#allocation3 + $0x1], 1 }
  0x62   :  { %185 = vsyncpa [#allocation4], 1 }
  0x63   :  { %187 = vsyncpa [#allocation4 + $0x1], 1 }

</bundles_post_ra>
